<compile_context>
chip_gen: v6e
topology: v6e:2x2x1
jax: 0.10.0
libtpu: 0.0.40
codegen_flags: <defaults>
</compile_context>

<pallas_src>
import functools

import jax
import jax.numpy as jnp
from jax.experimental import pallas as pl
from jax.experimental.pallas import tpu as pltpu


# ------------------------------------------------------------------ utilities
_VMEM_LIMIT = 32 * 1024 * 1024                 # > v5e default (16 MiB), < v7x phys (64 MiB)
_ROW_TILES = (512, 256, 128, 64, 32, 16, 8)    # sublane-axis tiles (matmul rows)
_LANE_TILES = (512, 256, 128)                  # lane-axis tiles (256-multiples for v6e MXU)
_ATTN_Q_TILES = (256, 128, 64, 32, 16, 8)      # smaller query tiles -> softmax fits vregs


def _tile(dim, candidates):
    """Largest candidate that evenly divides `dim`, else the full dim."""
    for c in candidates:
        if dim % c == 0:
            return c
    return dim


# ----------------------------------------------------- fused QKV projection
def _qkv_kernel(x_ref, w_ref, b_ref, o_ref, acc_ref):
    k = pl.program_id(3)

    @pl.when(k == 0)
    def _():
        acc_ref[...] = jnp.zeros_like(acc_ref)

    # Native-dtype operands straight into the MXU; f32 accumulate.
    acc_ref[...] += jnp.dot(x_ref[...], w_ref[0],
                            preferred_element_type=jnp.float32)

    @pl.when(k == pl.num_programs(3) - 1)
    def _():
        o_ref[0] = (acc_ref[...] + b_ref[0]).astype(o_ref.dtype)


def qkv_projection(x, w3, b3):
    """x: (M, K), w3: (3, K, D), b3: (3, 1, D) -> qkv: (3, M, D)."""
    M, K = x.shape
    _, _, D = w3.shape
    tm = _tile(M, _ROW_TILES)
    tn = _tile(D, _LANE_TILES)
    tk = _tile(K, _LANE_TILES)
    grid = (3, M // tm, D // tn, K // tk)
    return pl.pallas_call(
        _qkv_kernel,
        out_shape=jax.ShapeDtypeStruct((3, M, D), x.dtype),
        grid_spec=pltpu.PrefetchScalarGridSpec(
            num_scalar_prefetch=0,
            grid=grid,
            in_specs=[
                pl.BlockSpec((tm, tk), lambda g, i, j, k: (i, k)),      # x
                pl.BlockSpec((1, tk, tn), lambda g, i, j, k: (g, k, j)),  # w3
                pl.BlockSpec((1, 1, tn), lambda g, i, j, k: (g, 0, j)),   # b3
            ],
            out_specs=pl.BlockSpec((1, tm, tn), lambda g, i, j, k: (g, i, j)),
            scratch_shapes=[pltpu.VMEM((tm, tn), jnp.float32)],
        ),
        compiler_params=pltpu.CompilerParams(
            dimension_semantics=("parallel", "parallel", "parallel", "arbitrary"),
            vmem_limit_bytes=_VMEM_LIMIT),
    )(x, w3, b3)


# ----------------------------------------------------------------- attention
def _attn_kernel(q_ref, k_ref, v_ref, o_ref, *, scale, num_heads, head_dim):
    q = q_ref[0, 0]                      # (tq, D), native dtype
    k = k_ref[0, 0]                      # (Nk, D)
    v = v_ref[0, 0]                      # (Nk, D)
    outs = []
    for h in range(num_heads):           # static per-head lane slices
        lo, hi = h * head_dim, (h + 1) * head_dim
        qh = q[:, lo:hi]
        kh = k[:, lo:hi]
        vh = v[:, lo:hi]
        s = jax.lax.dot_general(qh, kh, (((1,), (1,)), ((), ())),
                                preferred_element_type=jnp.float32) * scale
        m = jnp.max(s, axis=-1, keepdims=True)
        p = jnp.exp(s - m)
        l = jnp.sum(p, axis=-1, keepdims=True)
        oh = jnp.dot(p.astype(vh.dtype), vh, preferred_element_type=jnp.float32)
        outs.append(oh / l)
    # Single lane-dense (tq, D) store straight into the (B, N, D) layout.
    o_ref[0] = jnp.concatenate(outs, axis=-1).astype(o_ref.dtype)


def attention(qkv, scale, num_heads, head_dim, out_dtype):
    """qkv: (3, B, N, D) -> (B, N, D). q/k/v selected via BlockSpec indices."""
    _, B, N, D = qkv.shape
    tq = _tile(N, _ATTN_Q_TILES)
    grid = (B, N // tq)
    # TODO(synk): for long sequences stream K/V in Nk tiles (flash-style online
    #             softmax) so the resident K/V + softmax footprint stays under
    #             v7x's 64 MiB VMEM.
    return pl.pallas_call(
        functools.partial(_attn_kernel, scale=scale,
                          num_heads=num_heads, head_dim=head_dim),
        out_shape=jax.ShapeDtypeStruct((B, N, D), out_dtype),
        grid_spec=pltpu.PrefetchScalarGridSpec(
            num_scalar_prefetch=0,
            grid=grid,
            in_specs=[
                pl.BlockSpec((1, 1, tq, D), lambda b, qi: (0, b, qi, 0)),  # q
                pl.BlockSpec((1, 1, N, D), lambda b, qi: (1, b, 0, 0)),    # k
                pl.BlockSpec((1, 1, N, D), lambda b, qi: (2, b, 0, 0)),    # v
            ],
            out_specs=pl.BlockSpec((1, tq, D), lambda b, qi: (b, qi, 0)),
        ),
        compiler_params=pltpu.CompilerParams(
            dimension_semantics=("parallel", "parallel"),
            vmem_limit_bytes=_VMEM_LIMIT),
    )(qkv, qkv, qkv)


# -------------------- proj step: out = res + x @ W + b, fused BN statistics
def _linear_res_stats_kernel(x_ref, w_ref, b_ref, r_ref, o_ref, st_ref, acc_ref):
    k = pl.program_id(2)

    @pl.when(k == 0)
    def _():
        acc_ref[...] = jnp.zeros_like(acc_ref)

    acc_ref[...] += jnp.dot(x_ref[...], w_ref[...],
                            preferred_element_type=jnp.float32)

    @pl.when(k == pl.num_programs(2) - 1)
    def _():
        out = acc_ref[...] + b_ref[...] + r_ref[...]
        o_ref[...] = out.astype(o_ref.dtype)
        # BatchNorm partial statistics for this row-block (sum / sum of squares).
        s1 = jnp.sum(out, axis=0, keepdims=True)
        s2 = jnp.sum(out * out, axis=0, keepdims=True)
        pad = jnp.zeros((6, out.shape[1]), jnp.float32)
        st_ref[0] = jnp.concatenate([s1, s2, pad], axis=0)


def linear_res_stats(x, w, b, res):
    """out = res + x @ w + b, plus per-row-block column sum / sumsq partials."""
    M, K = x.shape
    _, N = w.shape
    tm = _tile(M, _ROW_TILES)
    tn = _tile(N, _LANE_TILES)
    tk = _tile(K, _LANE_TILES)
    gi = M // tm
    grid = (gi, N // tn, K // tk)
    return pl.pallas_call(
        _linear_res_stats_kernel,
        out_shape=(jax.ShapeDtypeStruct((M, N), x.dtype),
                   jax.ShapeDtypeStruct((gi, 8, N), jnp.float32)),
        grid_spec=pltpu.PrefetchScalarGridSpec(
            num_scalar_prefetch=0,
            grid=grid,
            in_specs=[
                pl.BlockSpec((tm, tk), lambda i, j, k: (i, k)),   # x
                pl.BlockSpec((tk, tn), lambda i, j, k: (k, j)),   # w
                pl.BlockSpec((1, tn), lambda i, j, k: (0, j)),    # bias
                pl.BlockSpec((tm, tn), lambda i, j, k: (i, j)),   # residual
            ],
            out_specs=[pl.BlockSpec((tm, tn), lambda i, j, k: (i, j)),
                       pl.BlockSpec((1, 8, tn), lambda i, j, k: (i, 0, j))],
            scratch_shapes=[pltpu.VMEM((tm, tn), jnp.float32)],
        ),
        compiler_params=pltpu.CompilerParams(
            dimension_semantics=("parallel", "parallel", "arbitrary"),
            vmem_limit_bytes=_VMEM_LIMIT),
    )(x, w, b, res)


# -------------------------- MLP step: out = res + (x*scale + shift) @ W + b
def _bn_linear_res_kernel(x_ref, sc_ref, sh_ref, w_ref, b_ref, r_ref,
                          o_ref, acc_ref):
    k = pl.program_id(2)

    @pl.when(k == 0)
    def _():
        acc_ref[...] = jnp.zeros_like(acc_ref)

    # Folded BatchNorm applied in f32, then cast back to the activation dtype so
    # the MXU consumes its native (e.g. bf16) operand width.
    xn = (x_ref[...] * sc_ref[...] + sh_ref[...]).astype(x_ref.dtype)
    acc_ref[...] += jnp.dot(xn, w_ref[...], preferred_element_type=jnp.float32)

    @pl.when(k == pl.num_programs(2) - 1)
    def _():
        o_ref[...] = (acc_ref[...] + b_ref[...] + r_ref[...]).astype(o_ref.dtype)


def bn_linear_res(x, col_scale, col_shift, w, b, res):
    """res + ((x * col_scale + col_shift) @ w + b)."""
    M, K = x.shape
    _, N = w.shape
    tm = _tile(M, _ROW_TILES)
    tn = _tile(N, _LANE_TILES)
    tk = _tile(K, _LANE_TILES)
    grid = (M // tm, N // tn, K // tk)
    return pl.pallas_call(
        _bn_linear_res_kernel,
        out_shape=jax.ShapeDtypeStruct((M, N), x.dtype),
        grid_spec=pltpu.PrefetchScalarGridSpec(
            num_scalar_prefetch=0,
            grid=grid,
            in_specs=[
                pl.BlockSpec((tm, tk), lambda i, j, k: (i, k)),   # x
                pl.BlockSpec((1, tk), lambda i, j, k: (0, k)),    # BN scale
                pl.BlockSpec((1, tk), lambda i, j, k: (0, k)),    # BN shift
                pl.BlockSpec((tk, tn), lambda i, j, k: (k, j)),   # w
                pl.BlockSpec((1, tn), lambda i, j, k: (0, j)),    # bias
                pl.BlockSpec((tm, tn), lambda i, j, k: (i, j)),   # residual
            ],
            out_specs=pl.BlockSpec((tm, tn), lambda i, j, k: (i, j)),
            scratch_shapes=[pltpu.VMEM((tm, tn), jnp.float32)],
        ),
        compiler_params=pltpu.CompilerParams(
            dimension_semantics=("parallel", "parallel", "arbitrary"),
            vmem_limit_bytes=_VMEM_LIMIT),
    )(x, col_scale, col_shift, w, b, res)


# --------------------------------------------------------- parameter prep
def prepare_params(params):
    """Stack / transpose static weights once (hoisted out of the forward)."""
    D = params["wq"].shape[0]
    w_qkv = jnp.stack([params["wq"].T, params["wk"].T, params["wv"].T])  # (3, D, D)
    b_qkv = jnp.stack([params["bq"], params["bk"], params["bv"]]).reshape(3, 1, D)
    return dict(
        w_qkv=w_qkv, b_qkv=b_qkv,
        wp_t=params["wp"].T, bp=params["bp"][None, :],
        wm_t=params["wm"].T, bm=params["bm"][None, :],
        bn_gamma=params["bn_gamma"], bn_beta=params["bn_beta"],
        bn_running_mean=params["bn_running_mean"],
        bn_running_var=params["bn_running_var"],
    )


# ---------------------------------------------------------------- full forward
def encoder_forward(x, prep, *, num_heads, training=True, bn_eps=1e-5):
    """Pallas implementation of Encoder.forward.  x: (B, N, D)."""
    B, N, D = x.shape
    H = num_heads
    assert D % H == 0
    hd = D // H
    M = B * N
    x2d = x.reshape(M, D)

    # --- fused QKV projection: (3, M, D); reshape to (3, B, N, D) is a free view
    qkv = qkv_projection(x2d, prep["w_qkv"], prep["b_qkv"]).reshape(3, B, N, D)

    # --- multi-head attention, output written lane-dense into (B, N, D)
    a = attention(qkv, float(hd) ** -0.5, H, hd, x.dtype)
    a2d = a.reshape(M, D)

    # --- x1 = x + proj(attn); BN column stats fused into the same kernel
    x1, stats = linear_res_stats(a2d, prep["wp_t"], prep["bp"], x2d)

    # --- BatchNorm1d folded to per-feature scale/shift ---
    if training:   # PyTorch default mode: normalize with batch statistics
        mean = jnp.sum(stats[:, 0, :], axis=0) / M
        ex2 = jnp.sum(stats[:, 1, :], axis=0) / M
        var = jnp.maximum(ex2 - mean * mean, 0.0)
    else:          # eval mode: running statistics
        mean = prep["bn_running_mean"].astype(jnp.float32)
        var = prep["bn_running_var"].astype(jnp.float32)
    # TODO(synk): running-stat (momentum) updates are a training side effect of
    #             nn.BatchNorm1d and are not part of the returned forward value.
    inv_std = jax.lax.rsqrt(var + bn_eps)
    g = prep["bn_gamma"].astype(jnp.float32)
    bn_scale = (g * inv_std)[None, :]
    bn_shift = (prep["bn_beta"].astype(jnp.float32) - mean * g * inv_std)[None, :]

    # --- x = x1 + mlp(bn(x1)), BN fused into the matmul prologue ---
    out2d = bn_linear_res(x1, bn_scale, bn_shift, prep["wm_t"], prep["bm"], x1)
    return out2d.reshape(B, N, D)


# ---------------------------------------------------------------- pure-JAX ref
def encoder_ref(x, params, *, num_heads, training=True, bn_eps=1e-5):
    B, N, D = x.shape
    H = num_heads
    hd = D // H
    scl = float(hd) ** -0.5

    def lin(t, w, b):
        return t @ w.T + b

    q = lin(x, params["wq"], params["bq"]).reshape(B, N, H, hd).transpose(0, 2, 1, 3)
    k = lin(x, params["wk"], params["bk"]).reshape(B, N, H, hd).transpose(0, 2, 1, 3)
    v = lin(x, params["wv"], params["bv"]).reshape(B, N, H, hd).transpose(0, 2, 1, 3)
    attn = jax.nn.softmax(jnp.einsum("bhqd,bhkd->bhqk", q, k) * scl, axis=-1)
    a = jnp.einsum("bhqk,bhkd->bhqd", attn, v).transpose(0, 2, 1, 3).reshape(B, N, D)
    x1 = x + lin(a, params["wp"], params["bp"])

    x1f = x1.reshape(B * N, D)
    if training:
        mean = jnp.mean(x1f, axis=0)
        var = jnp.var(x1f, axis=0)
    else:
        mean = params["bn_running_mean"]
        var = params["bn_running_var"]
    xbn = (x1f - mean) * jax.lax.rsqrt(var + bn_eps) * params["bn_gamma"] + params["bn_beta"]
    out = x1f + xbn @ params["wm"].T + params["bm"]
    return out.reshape(B, N, D)


# ------------------------------------------------------------------------ main
if __name__ == "__main__":
    key = jax.random.PRNGKey(0)
    B, N, D, H = 2, 8, 32, 4
    keys = jax.random.split(key, 10)

    def tn_init(k, shape, std=0.02):
        # Host-side stand-in for trunc_normal_ (exact distribution irrelevant to
        # the forward-pass semantics being tested).
        return std * jnp.clip(jax.random.normal(k, shape, dtype=jnp.float32), -2.0, 2.0)

    params = dict(
        # qkv_bias=False in the reference module -> zero q/k/v/proj biases.
        wq=tn_init(keys[0], (D, D)), bq=jnp.zeros((D,), jnp.float32),
        wk=tn_init(keys[1], (D, D)), bk=jnp.zeros((D,), jnp.float32),
        wv=tn_init(keys[2], (D, D)), bv=jnp.zeros((D,), jnp.float32),
        # proj is zero-initialized in the module; use random weights here so the
        # attention path is actually exercised by the correctness check.
        wp=tn_init(keys[3], (D, D)), bp=jnp.zeros((D,), jnp.float32),
        wm=tn_init(keys[4], (D, D)), bm=tn_init(keys[5], (D,)),
        bn_gamma=jnp.ones((D,), jnp.float32) + 0.1 * jax.random.normal(keys[6], (D,)),
        bn_beta=0.1 * jax.random.normal(keys[7], (D,)),
        bn_running_mean=jnp.zeros((D,), jnp.float32),
        bn_running_var=jnp.ones((D,), jnp.float32),
    )
    x = jax.random.normal(keys[8], (B, N, D), dtype=jnp.float32)

    prep = prepare_params(params)          # done once; cache alongside the params
    out = encoder_forward(x, prep, num_heads=H, training=True)
    jax.block_until_ready(out)

    ref = encoder_ref(x, params, num_heads=H, training=True)
    assert out.shape == (B, N, D), out.shape
    max_err = float(jnp.max(jnp.abs(out - ref)))
    assert jnp.allclose(out, ref, atol=1e-4, rtol=1e-4), max_err

    print("KERNEL_OK")
</pallas_src>

<mosaic_0001>
module attributes {stable_mosaic.version = 11 : i64} {
  func.func @_qkv_kernel(%arg0: i32, %arg1: i32, %arg2: i32, %arg3: i32, %arg4: memref<16x32xf32, #tpu.memory_space<vmem>>, %arg5: memref<1x32x32xf32, #tpu.memory_space<vmem>>, %arg6: memref<1x1x32xf32, #tpu.memory_space<vmem>>, %arg7: memref<1x16x32xf32, #tpu.memory_space<vmem>>, %arg8: memref<16x32xf32, #tpu.memory_space<vmem>>) attributes {dimension_semantics = [#tpu.dimension_semantics<parallel>, #tpu.dimension_semantics<parallel>, #tpu.dimension_semantics<parallel>, #tpu.dimension_semantics<arbitrary>], iteration_bounds = array<i64: 3, 1, 1, 1>, scalar_prefetch = 0 : i64, scratch_operands = 1 : i64, tpu.core_type = #tpu.core_type<tc>, window_params = [{transform_indices = @transform_0, window_bounds = array<i64: 16, 32>}, {transform_indices = @transform_1, window_bounds = array<i64: 1, 32, 32>}, {transform_indices = @transform_2, window_bounds = array<i64: 1, 1, 32>}, {transform_indices = @transform_3, window_bounds = array<i64: 1, 16, 32>}]} {
    %c0_i32 = arith.constant 0 : i32
    %0 = arith.cmpi eq, %arg3, %c0_i32 : i32
    %1 = arith.extui %0 : i1 to i32
    %c0_i32_0 = arith.constant 0 : i32
    %2 = arith.cmpi ne, %1, %c0_i32_0 : i32
    scf.if %2 {
      %cst_11 = arith.constant 0.000000e+00 : f32
      %13 = vector.broadcast %cst_11 : f32 to vector<16x32xf32>
      %c0_12 = arith.constant 0 : index
      %c0_13 = arith.constant 0 : index
      %14 = vector.load %arg8[%c0_12, %c0_13] : memref<16x32xf32, #tpu.memory_space<vmem>>, vector<16x32xf32>
      tpu.vector_store %arg8[%c0_12, %c0_13], %13 {strides = array<i32>} : memref<16x32xf32, #tpu.memory_space<vmem>>, vector<16x32xf32>,
    } else {
    }
    %c0 = arith.constant 0 : index
    %c0_1 = arith.constant 0 : index
    %3 = vector.load %arg8[%c0, %c0_1] : memref<16x32xf32, #tpu.memory_space<vmem>>, vector<16x32xf32>
    %c0_2 = arith.constant 0 : index
    %c0_3 = arith.constant 0 : index
    %4 = vector.load %arg4[%c0_2, %c0_3] : memref<16x32xf32, #tpu.memory_space<vmem>>, vector<16x32xf32>
    %c0_4 = arith.constant 0 : index
    %c0_5 = arith.constant 0 : index
    %c0_6 = arith.constant 0 : index
    %5 = vector.load %arg5[%c0_4, %c0_5, %c0_6] : memref<1x32x32xf32, #tpu.memory_space<vmem>>, vector<1x32x32xf32>
    %6 = vector.shape_cast %5 : vector<1x32x32xf32> to vector<32x32xf32>
    %cst = arith.constant dense<0.000000e+00> : vector<16x32xf32>
    %7 = tpu.matmul %4, %6, %cst {dimension_numbers = #tpu.dot_dimension_numbers<[1], [0], [0], [1], [0, 0, 1, 1], [], []>} : vector<16x32xf32>, vector<32x32xf32>, vector<16x32xf32> -> vector<16x32xf32>
    %8 = arith.addf %3, %7 : vector<16x32xf32>
    %c0_7 = arith.constant 0 : index
    %c0_8 = arith.constant 0 : index
    %9 = vector.load %arg8[%c0_7, %c0_8] : memref<16x32xf32, #tpu.memory_space<vmem>>, vector<16x32xf32>
    tpu.vector_store %arg8[%c0_7, %c0_8], %8 {strides = array<i32>} : memref<16x32xf32, #tpu.memory_space<vmem>>, vector<16x32xf32>,
    %c0_i32_9 = arith.constant 0 : i32
    %10 = arith.cmpi eq, %arg3, %c0_i32_9 : i32
    %11 = arith.extui %10 : i1 to i32
    %c0_i32_10 = arith.constant 0 : i32
    %12 = arith.cmpi ne, %11, %c0_i32_10 : i32
    scf.if %12 {
      %c0_11 = arith.constant 0 : index
      %c0_12 = arith.constant 0 : index
      %13 = vector.load %arg8[%c0_11, %c0_12] : memref<16x32xf32, #tpu.memory_space<vmem>>, vector<16x32xf32>
      %c0_13 = arith.constant 0 : index
      %c0_14 = arith.constant 0 : index
      %c0_15 = arith.constant 0 : index
      %14 = vector.load %arg6[%c0_13, %c0_14, %c0_15] : memref<1x1x32xf32, #tpu.memory_space<vmem>>, vector<1x1x32xf32>
      %15 = vector.shape_cast %14 : vector<1x1x32xf32> to vector<1x32xf32>
      %16 = vector.broadcast %15 : vector<1x32xf32> to vector<16x32xf32>
      %17 = arith.addf %13, %16 : vector<16x32xf32>
      %c0_16 = arith.constant 0 : index
      %c0_17 = arith.constant 0 : index
      %c0_18 = arith.constant 0 : index
      %18 = vector.load %arg7[%c0_16, %c0_17, %c0_18] : memref<1x16x32xf32, #tpu.memory_space<vmem>>, vector<1x16x32xf32>
      %19 = vector.shape_cast %18 : vector<1x16x32xf32> to vector<16x32xf32>
      %20 = vector.shape_cast %17 : vector<16x32xf32> to vector<1x16x32xf32>
      tpu.vector_store %arg7[%c0_16, %c0_17, %c0_18], %20 {strides = array<i32>} : memref<1x16x32xf32, #tpu.memory_space<vmem>>, vector<1x16x32xf32>,
    } else {
    }
    return
  }
  func.func @transform_0(%arg0: i32, %arg1: i32, %arg2: i32, %arg3: i32) -> (i32, i32) {
    %c0_i32 = arith.constant 0 : i32
    return %arg1, %arg3 : i32, i32
  }
  func.func @transform_1(%arg0: i32, %arg1: i32, %arg2: i32, %arg3: i32) -> (i32, i32, i32) {
    %c0_i32 = arith.constant 0 : i32
    return %arg0, %arg3, %arg2 : i32, i32, i32
  }
  func.func @transform_2(%arg0: i32, %arg1: i32, %arg2: i32, %arg3: i32) -> (i32, i32, i32) {
    %c0_i32 = arith.constant 0 : i32
    %c0_i32_0 = arith.constant 0 : i32
    return %arg0, %c0_i32, %arg2 : i32, i32, i32
  }
  func.func @transform_3(%arg0: i32, %arg1: i32, %arg2: i32, %arg3: i32) -> (i32, i32, i32) {
    %c0_i32 = arith.constant 0 : i32
    return %arg0, %arg1, %arg2 : i32, i32, i32
  }
}

</mosaic_0001>

<bundles_post_ra>
// kernel: tpu_custom_call.1
= control target key start
LH: loop header
LB: loop body
LE: loop exit
PB: predicated region body
PF: predicated region fallthrough
CT: control target
= control target key end

     0   :  { %8 = vsyncpa [#allocation4], 0  ;;  %s1021_s0 = inlined_call_operand.hbm [shape: f32[16,32], index: 0, kind: input, shape index: {}]   ;;  %s1022_s1 = inlined_call_operand.hbm [shape: f32[3,32,32], index: 1, kind: input, shape index: {}]   ;;  %s1023_s2 = inlined_call_operand.vmem [shape: f32[3,1,32], index: 2, kind: input, shape index: {}]   ;;  %s1024_s3 = inlined_call_operand.hbm [shape: f32[3,16,32], index: 3, kind: output, shape index: {}]  }
   0x1   :  { %9 = vsyncpa [#allocation7], 0 }
   0x2   :  { %11 = vsyncpa [#allocation7 + $0x1], 0 }
   0x3   :  { %12 = vsyncpa [#allocation5], 0 }
   0x4   :  { %14 = vsyncpa [#allocation5 + $0x1], 0  ;;  %s822_s12 = smov 0   ;;  %s824_s13 = smov 0  }
   0x5   :  { %s826_s14 = smov 0   ;;  %s828_s15 = smov 0  }
   0x6   :  { %s830_s16 = smov 0   ;;  %s832_s17 = smov 0  }
   0x7 LB: > { %s537_s18 = sadd.s32 4294967295, %s792_s17   ;;  %s538_s19 = sadd.s32 4294967294, %s792_s17   ;;  %s792_s17 = sphi %s832_s17, %s20_s17   ;;  %s788_s16 = sphi %s830_s16, %s1045_s16   ;;  %s784_s15 = sphi %s828_s15, %s1044_s15   ;;  %s780_s14 = sphi %s826_s14, %s1043_s14   ;;  %s776_s13 = sphi %s824_s13, %s1042_s13   ;;  %s772_s12 = sphi %s822_s12, %s1041_s12  }
   0x8   : > { %p98_p0 = scmp.ne.s32.totalorder %s776_s13, %s772_s12  ;;  %p856_p1 = scmp.eq.s32.totalorder %s537_s18, 0 }
   0x9   : > { %p860_p2 = scmp.eq.s32.totalorder %s537_s18, 2  ;;  %p160_p3 = scmp.eq.s32.totalorder %s538_s19, 2 }
   0xa   : > { %p866_p4 = por %p856_p1, %p98_p0  ;;  %p539_p5 = scmp.ge.s32.totalorder %s792_s17, 1 }
   0xb   : > { %p871_p6 = por %p160_p3, %p98_p0  ;;  %p167_p7 = scmp.lt.s32.totalorder %s792_s17, 4 }
   0xc   : > { %s794_s25 = smov [#allocation3]   ;;  %s46_s28 = sadd.s32 1, %s788_s16 }
   0xd   : > { %s1031_s23 = scalar_select %p871_p6, 1, 0 }
   0xe   : > { %p876_p8 = pnand %p539_p5, %p167_p7  ;;  %s183_s26 = sshll.u32 %s794_s25, 4  ;;  %s184_s26 = int_to_ptr.vmem [resolvable:$true] %s183_s26 }
   0xf   : > { %s665_s29 = scalar_lea.vmem %s184_s26, 256  ;;  %p673_p3 = scmp.lt.s32.totalorder %s184_s26, %s184_s26 }
  0x10   : > { %p584_p9 = pneg %p876_p8  ;;  %p666_p12 = scmp.ne.s32.totalorder %s184_s26, %s665_s29 }
  0x11   : > { %p674_p5 = scmp.lt.s32.totalorder %s665_s29, %s665_s29 }
  0x12   : > { %p884_p10 = pnand %p584_p9, %p856_p1 }
  0x13   : > { %p675_p7 = por %p674_p5, %p673_p3 }
  0x14   : > { %p656_p11 = pneg %p884_p10 }
  0x16   : > { %p668_p13 = pnand %p666_p12, %p656_p11 }
  0x18   : > { %p669_p0 = pneg %p668_p13 }
  0x1a   : > { %p676_p6 = pnand %p675_p7, %p669_p0 }
  0x1c   : > { %679 = shalt.err (!%p676_p6)
}
  0x1d   : > { %s1025_s30 = smov 128   ;;  %s1026_s4 = smov 8  }
  0x1e   : > { %587 = dma.hbm_to_vmem [thread:$0]  (!%p884_p10), %s1021_s0, 256, %s184_s26, [#allocation4], %s1025_s30, %s1025_s30, %s1026_s4  }
  0x1f   : > { %p48_p6 = scmp.ge.s32.totalorder %s46_s28, 3  ;;  %s85_s7 = sadd.s32 1, %s780_s14 }
  0x20   : > { %p92_p9 = scmp.ne.s32.totalorder %s780_s14, %s776_s13  ;;  %p93_p11 = scmp.eq.s32.totalorder %s792_s17, 0 }
  0x21   : > { %s1047_s28 = smov (%p48_p6, %s46_s28), 0  ;;  %p597_p0 = scmp.lt.s32.totalorder %s792_s17, 3 }
  0x22   : > { %p905_p12 = por %p93_p11, %p92_p9  ;;  %p911_p13 = por %p860_p2, %p92_p9 }
  0x23   : > { %s78_s10 = ssub.s32 %s788_s16, %s1047_s28  ;;  %s197_s11 = sand.u32 1, %s780_s14  }
  0x24   : > { %s1035_s9 = scalar_select %p911_p13, 1, 0 }
  0x25   : > { %p83_p10 = scmp.eq.s32.totalorder %s78_s10, 0  ;;  %s542_s18 = sshll.u32 %s197_s11, 5 }
  0x26   : > { %s557_s25 = sshll.u32 %s788_s16, 9  ;;  %s201_s5 = scalar_lea.vmem [#allocation6], %s542_s18 }
  0x27   : > { %s920_s19 = scalar_select %p83_p10, %s780_s14, %s85_s7  }
  0x28   : > { %s210_s29 = scalar_lea.hbm %s1022_s1, %s557_s25  ;;  %s211_s6 = sshll.u32 %s201_s5, 4  ;;  %s212_s6 = int_to_ptr.vmem [resolvable:$true] %s211_s6 }
  0x29   : > { %p928_p2 = pnand %p597_p0, %p905_p12  ;;  %s198_s30 = scalar_lea.sflag [#allocation7], %s197_s11 }
  0x2a   : > { %s693_s10 = scalar_lea.vmem %s212_s6, 512  ;;  %s797_s7 = smov [#allocation6]  }
  0x2b   : > { %p682_p3 = pneg %p928_p2  ;;  %p694_p5 = scmp.ne.s32.totalorder %s212_s6, %s693_s10 }
  0x2c   : > { %s698_s4 = sshll.u32 %s797_s7, 4  ;;  %s699_s4 = int_to_ptr.vmem [resolvable:$false] %s698_s4 }
  0x2d   : > { %p696_p7 = pnand %p694_p5, %p682_p3  ;;  %s700_s25 = scalar_lea.vmem %s699_s4, 1024 }
  0x2e   : > { %p701_p9 = scmp.lt.s32.totalorder %s212_s6, %s699_s4  ;;  %p702_p11 = scmp.lt.s32.totalorder %s700_s25, %s693_s10 }
  0x2f   : > { %p697_p6 = pneg %p696_p7 }
  0x30   : > { %p703_p10 = por %p702_p11, %p701_p9 }
  0x32   : > { %p704_p13 = pnand %p703_p10, %p697_p6 }
  0x34   : > { %707 = shalt.err (!%p704_p13)
}
  0x35   : > { %s1037_s8 = smov 8   ;;  %s1038_s18 = smov 128  }
  0x36   : > { %591 = dma.hbm_to_vmem [thread:$0]  (!%p928_p2), %s210_s29, 512, %s212_s6, %s198_s30, %s1038_s18, %s1038_s18, %s1037_s8  }
  0x37   : > { %232 = sbr.rel (%p876_p8) target bundleno = 295 (0x127), region = 32 }
  0x3c   : > { %759 = dma.done.wait (%p856_p1), [#allocation4], 256  }
  0x3d   : > { %761 = vsyncadd (%p856_p1), [#allocation4], 4294967040  ;;  %s946_s4 = sand.u32 1, %s776_s13  }
  0x3e   : > { %s547_s11 = sshll.u32 %s946_s4, 5  ;;  %s239_s26 = scalar_lea.sflag [#allocation7], %s946_s4 }
  0x3f   : > { %s242_s27 = scalar_lea.vmem [#allocation6], %s547_s11 }
  0x40   : > { %763 = dma.done.wait (%p866_p4), %s239_s26, 512  }
  0x41   : > { %765 = vsyncadd (%p866_p4), %s239_s26, 4294966784  ;;  %vm284_vm0 = vcmask 261120   ;;  %v798_v0 = vmov 0.0   ;;  %v294_v1 = vld [vmem:[%s242_s27 + $0x18] sm:$0xff]  ;;  %v293_v2 = vld [vmem:[%s242_s27 + $0x10] sm:$0xff]  ;;  %p273_p1 = scmp.lt.s32.totalorder %s784_s15, 2 }
  0x42   : > { %286 = vst.msk [vmem:[#allocation2 + $0x8] sm:$0xff] %vm284_vm0, %v798_v0  ;;  %285 = vst.msk [vmem:[#allocation2] sm:$0xff] %vm284_vm0, %v798_v0  ;;  %565 = vmatprep.subr.mxu0 %v294_v1  ;;  %v289_v3 = vld [vmem:[#allocation3] sm:$0xff]  ;;  %v292_v4 = vld [vmem:[%s242_s27 + $0x8] sm:$0xff]  ;;  %s548_s22 = sshll.u32 %s946_s4, 4  ;;  %s558_s5 = sshll.u32 %s784_s15, 8 }
  0x43   : > { %566 = vmatpush3.msra.mxu0 %v294_v1  ;;  %573 = vmatprep.mubr.msk.f32.mxu0 %vm284_vm0, %v289_v3  ;;  %v291_v5 = vld [vmem:[%s242_s27] sm:$0xff]  ;;  %v290_v6 = vld [vmem:[#allocation3 + $0x8] sm:$0xff]  ;;  %s274_s20 = scalar_select %p273_p1, %s784_s15, 2 }
  0x44   : > { %567 = vmatprep.subr.mxu0 %v293_v2  ;;  %s270_s6 = scalar_lea.vmem [#allocation8], %s548_s22  ;;  %s970_s25 = scalar_lea.hbm %s1024_s3, %s558_s5 }
  0x45   : > { %568 = vmatpush3.msra.mxu0 %v293_v2  ;;  %s278_s29 = scalar_lea.vmem %s1023_s2, %s274_s20  ;;  %s414_s21 = sshll.u32 %s270_s6, 4  ;;  %s972_s21 = int_to_ptr.vmem [resolvable:$true] %s414_s21 }
  0x46   : > { %569 = vmatprep.subr.mxu0 %v292_v4  ;;  %v551_v13 = vld [vmem:[%s278_s29] ss:$0 sm:$0xff]  ;;  %s398_s15 = scalar_lea.sflag [#allocation5], %s946_s4  ;;  %s708_s8 = scalar_lea.vmem %s972_s21, 256 }
  0x47   : > { %570 = vmatpush3.msra.mxu0 %v292_v4  ;;  %p709_p4 = scmp.ne.s32.totalorder %s972_s21, %s708_s8  ;;  %p1039_p8 = scmp.ne.s32.totalorder %s1035_s9, 0 }
  0x48   : > { %571 = vmatprep.subr.mxu0 %v291_v5  ;;  %s799_s18 = smov [#allocation8]  }
  0x49   : > { %572 = vmatpush3.msra.mxu0 %v291_v5  ;;  %v288_v7 = vld [vmem:[#allocation2 + $0x8] sm:$0xff]  ;;  %v287_v9 = vld [vmem:[#allocation2] sm:$0xff]  ;;  %p710_p12 = pnand %p709_p4, %p1039_p8  ;;  %s712_s11 = sshll.u32 %s799_s18, 4  ;;  %s713_s11 = int_to_ptr.vmem [resolvable:$false] %s712_s11 }
  0x4a   : > { %574 = vmatmul.mubr.msk.f32.vlgmr.msra.gmra.mxu0 %vm284_vm0, %v290_v6  ;;  %s714_s26 = scalar_lea.vmem %s713_s11, 512  ;;  %p715_p0 = scmp.lt.s32.totalorder %s972_s21, %s713_s11 }
  0x4b   : > { %p711_p13 = pneg %p710_p12  ;;  %p716_p2 = scmp.lt.s32.totalorder %s714_s26, %s708_s8 }
  0x4d   : > { %p717_p3 = por %p716_p2, %p715_p0 }
  0x4f   : > { %p718_p5 = pnand %p717_p3, %p711_p13 }
 0x10a   : > { %v575_v8 = vpop.f32.mrf.mxu0 }
 0x10b   : > { %v378_v10 = vadd.f32 %v575_v8, %v288_v7 }
 0x10c   : > { %v368_v11 = vpop.f32.mrf.mxu0 }
 0x10d   : > { %380 = vst.msk [vmem:[#allocation2 + $0x8] sm:$0xff] %vm284_vm0, %v378_v10  ;;  %v377_v12 = vadd.f32 %v368_v11, %v287_v9 }
 0x10f   : > { %379 = vst.msk [vmem:[#allocation2] sm:$0xff] %vm284_vm0, %v377_v12 }
 0x114   : > { %v385_v14 = vld [vmem:[#allocation2 + $0x8] sm:$0xff] }
 0x115   : > { %v394_v15 = vadd.f32 %v551_v13, %v385_v14 }
 0x116   : > { %v384_v16 = vld [vmem:[#allocation2] sm:$0xff] }
 0x117   : > { %v393_v17 = vadd.f32 %v551_v13, %v384_v16  ;;  %396 = vst.msk [vmem:[%s270_s6 + $0x8] sm:$0xff] %vm284_vm0, %v394_v15 }
 0x119   : > { %395 = vst.msk [vmem:[%s270_s6] sm:$0xff] %vm284_vm0, %v393_v17 }
 0x11a   : > { %721 = shalt.err (!%p718_p5)
}
 0x11b   : > { %s722_s27 = scalar_lea.hbm %s970_s25, 256  ;;  %s726_s24 = scalar_lea.hbm %s1024_s3, 768 }
 0x11c   : > { %p723_p7 = scmp.ne.s32.totalorder %s970_s25, %s722_s27  ;;  %p727_p11 = scmp.lt.s32.totalorder %s970_s25, %s1024_s3 }
 0x11d   : > { %p728_p10 = scmp.lt.s32.totalorder %s726_s24, %s722_s27 }
 0x11e   : > { %p724_p6 = pnand %p723_p7, %p1039_p8 }
 0x11f   : > { %p729_p1 = por %p728_p10, %p727_p11 }
 0x120   : > { %p725_p9 = pneg %p724_p6 }
 0x122   : > { %p730_p4 = pnand %p729_p1, %p725_p9 }
 0x124   : > { %733 = shalt.err (!%p730_p4)
}
 0x125   : > { %s800_s5 = smov 128   ;;  %s801_s6 = smov 8  }
 0x126   : > { %582 = dma.vmem_to_hbm [thread:$0]  (%p1039_p8), %s972_s21, 256, %s970_s25, %s398_s15, %s800_s5, %s800_s5, %s801_s6  }
 0x127 PF: > { %p599_p12 = scmp.ge.s32.totalorder %s792_s17, 2  ;;  %s429_s10 = sand.u32 1, %s772_s12  }
 0x128   : > { %p1040_p13 = scmp.ne.s32.totalorder %s1031_s23, 0  ;;  %s430_s7 = scalar_lea.sflag [#allocation5], %s429_s10 }
 0x12a   : > { %p593_p0 = pnand %p599_p12, %p1040_p13 }
 0x12c   : > { %p594_p2 = pneg %p593_p0 }
 0x12e   : > { %767 = dma.done.wait (%p594_p2), %s430_s7, 256  }
 0x12f   : > { %769 = vsyncadd (%p594_p2), %s430_s7, 4294967040  ;;  %s20_s17 = sadd.s32 1, %s792_s17   ;;  %s1041_s12 = smov %s776_s13 }
 0x130   : > { %p17_p3 = scmp.ge.s32.totalorder %s20_s17, 5   ;;  %s1042_s13 = smov %s780_s14 }
 0x131   : > { %s1043_s14 = smov %s920_s19  ;;  %s1044_s15 = smov %s788_s16 }
 0x132   : > { %s1045_s16 = smov %s1047_s28  ;;  %19 = sbr.rel (!%p17_p3) target bundleno = 7 (0x7), region = 94 }
 0x137   :  { %435 = vsyncpa [#allocation4], 1 }
 0x138   :  { %437 = vsyncpa [#allocation4 + $0x1], 1 }
 0x139   :  { %438 = vsyncpa [#allocation7], 1 }
 0x13a   :  { %440 = vsyncpa [#allocation7 + $0x1], 1 }
 0x13b   :  { %441 = vsyncpa [#allocation5], 1 }
 0x13c   :  { %443 = vsyncpa [#allocation5 + $0x1], 1 }

</bundles_post_ra>
